<compile_context>
chip_gen: v7x
topology: tpu7x:2x2x1
jax: 0.10.0
libtpu: 0.0.40
codegen_flags: <defaults>
</compile_context>

<pallas_src>
import functools

import jax
import jax.numpy as jnp
from jax import lax
from jax.experimental import pallas as pl
from jax.experimental.pallas import tpu as pltpu

EPS = 1e-12
_VMEM_TILE_BUDGET = 24 * 1024 * 1024   # working-set budget (fits v7x 32 MiB scoped VMEM w/ headroom)
_VMEM_LIMIT_BYTES = 32 * 1024 * 1024   # explicit scoped-VMEM limit (<= v7x 64 MiB physical)
_MAX_TILE = 8192                       # lane-tile cap (amortizes ~0.35us per-grid-step overhead)


def _pow_static(x, e):
    """x ** e for a static exponent; exact square-and-multiply for small integer e."""
    e = float(e)
    if e == int(e) and 0 <= e <= 16:
        n = int(e)
        if n == 0:
            return jnp.ones_like(x)
        result = None
        base = x
        while n:
            if n & 1:
                result = base if result is None else result * base
            n >>= 1
            if n:
                base = base * base
        return result
    return jnp.power(x, e)


def _neg_focal_kernel(pred_ref, tgt_ref,          # (C, T) VMEM tiles (f32 or bf16)
                      out_ref,                    # (1, 1, 128) per-(batch, split) partial
                      acc_ref,                    # (acc_rows, T) f32 scratch
                      *, alpha, gamma, tile, hw_total, tiles_per_split,
                      acc_rows, num_ch):
    t = pl.program_id(2)
    nt = pl.num_programs(2)

    @pl.when(t == 0)
    def _init():
        acc_ref[...] = jnp.zeros_like(acc_ref)

    p = pred_ref[...].astype(jnp.float32)          # (C, T)
    tg = tgt_ref[...].astype(jnp.float32)          # (C, T)
    neg = jnp.log(1.0 - p + EPS) * _pow_static(p, alpha) * _pow_static(1.0 - tg, gamma)

    # Ragged last tile masked in-kernel (no wrapper jnp.pad / extra HBM pass).
    # select (not multiply) so garbage lanes past HW can never contaminate via NaN/inf.
    rem = hw_total % tile
    if rem:
        g = pl.program_id(1) * tiles_per_split + t       # global tile index along HW
        limit = jnp.where(g == hw_total // tile, rem, tile)
        lane = lax.broadcasted_iota(jnp.int32, (1, tile), 1)
        neg = jnp.where(lane < limit, neg, 0.0)

    # Fold C sublane-groups into acc_rows rows with plain vreg adds: keeps the
    # per-step accumulator read-modify-write independent of C, no XLU per step.
    num_groups = num_ch // acc_rows
    if num_groups > 1:
        folded = neg[0:acc_rows, :]
        for gi in range(1, num_groups):
            folded = folded + neg[gi * acc_rows:(gi + 1) * acc_rows, :]
        neg = folded
    acc_ref[...] += neg

    # Single cross-lane reduction per (batch, split), deferred to the last tile.
    @pl.when(t == nt - 1)
    def _finalize():
        lane = lax.broadcasted_iota(jnp.int32, (1, 1, 128), 2)
        out_ref[...] = jnp.where(lane == 0, jnp.sum(acc_ref[...]), 0.0)


def _pick_tile(hw, num_ch, in_bytes, acc_rows):
    """Largest lane-tile T (multiple of 128, <= _MAX_TILE) whose working set
    (2 inputs x 2 pipeline buffers x C x T x in_bytes + acc_rows x T x 4 scratch)
    fits the VMEM budget.  Full-extent HW is always allowed."""
    per_lane = 4 * num_ch * in_bytes + acc_rows * 4
    t = min(_VMEM_TILE_BUDGET // per_lane, _MAX_TILE)
    t = max(128, (t // 128) * 128)
    return hw if hw <= t else t


def fast_focal_loss(pred, target, ind, mask, cat, *,
                    weight=1.0, alpha=2.0, gamma=4.0, tile=None):
    """pred, target: (B, C, H, W); ind, mask, cat: (B, M). Returns scalar loss."""
    B, C, H, W = pred.shape
    HW = H * W

    # Channel-first flatten (free); keep bf16 end-to-end (no wrapper-side cast).
    pred_f = pred.reshape(B, C, HW)
    tgt_f = target.reshape(B, C, HW)
    if pred_f.dtype not in (jnp.float32, jnp.bfloat16):
        pred_f = pred_f.astype(jnp.float32)
    if tgt_f.dtype not in (jnp.float32, jnp.bfloat16):
        tgt_f = tgt_f.astype(jnp.float32)

    in_bytes = max(jnp.dtype(pred_f.dtype).itemsize, jnp.dtype(tgt_f.dtype).itemsize)
    acc_rows = 8 if (C % 8 == 0 and C >= 8) else C

    T = _pick_tile(HW, C, in_bytes, acc_rows) if tile is None else min(int(tile), HW)
    assert T == HW or T % 128 == 0, "tile must be a multiple of 128 or the full HW extent"

    tiles_total = pl.cdiv(HW, T)
    # If only one batch, split the HW tile range into two parallel halves so both
    # v7x TensorCores get work (harmless no-op on single-TC v5e/v6e).
    n_splits = 2 if (B == 1 and tiles_total >= 2 and tiles_total % 2 == 0) else 1
    tiles_per_split = tiles_total // n_splits

    kernel = functools.partial(
        _neg_focal_kernel, alpha=alpha, gamma=gamma, tile=T, hw_total=HW,
        tiles_per_split=tiles_per_split, acc_rows=acc_rows, num_ch=C)

    def hm_map(b, s, t):
        return (b, 0, s * tiles_per_split + t)

    grid_spec = pltpu.PrefetchScalarGridSpec(
        num_scalar_prefetch=0,
        grid=(B, n_splits, tiles_per_split),
        in_specs=[
            pl.BlockSpec((None, C, T), hm_map),      # pred tile   -> kernel sees (C, T)
            pl.BlockSpec((None, C, T), hm_map),      # target tile -> kernel sees (C, T)
        ],
        out_specs=pl.BlockSpec((1, 1, 128), lambda b, s, t: (b, s, 0)),
        scratch_shapes=[pltpu.VMEM((acc_rows, T), jnp.float32)],
    )

    neg_parts = pl.pallas_call(
        kernel,
        out_shape=jax.ShapeDtypeStruct((B, n_splits, 128), jnp.float32),
        grid_spec=grid_spec,
        compiler_params=pltpu.CompilerParams(
            dimension_semantics=("parallel", "parallel", "arbitrary"),
            vmem_limit_bytes=_VMEM_LIMIT_BYTES),
    )(pred_f, tgt_f)
    neg = jnp.sum(neg_parts)

    # Positive term: B x M gather (negligible HBM traffic) kept in plain JAX per
    # perf review -- removes all per-peak scalar work from the streaming kernel.
    maskf = mask.astype(jnp.float32)
    flat_idx = cat.astype(jnp.int32) * HW + ind.astype(jnp.int32)                    # (B, M)
    pos_pred = jnp.take_along_axis(pred_f.reshape(B, C * HW), flat_idx,
                                   axis=1).astype(jnp.float32)                       # (B, M)
    pos = jnp.sum(jnp.log(pos_pred + EPS) * _pow_static(1.0 - pos_pred, alpha) * maskf)

    num_pos = jnp.sum(maskf)
    loss_no_pos = -neg * weight
    loss_with_pos = -(pos + neg) * weight / jnp.maximum(num_pos, 1e-12)
    return jnp.where(num_pos == 0.0, loss_no_pos, loss_with_pos)


def _reference_loss(pred, target, ind, mask, cat, weight=1.0, alpha=2.0, gamma=4.0):
    """Pure-JAX reference mirroring the PyTorch forward."""
    eps = 1e-12
    B, C, H, W = pred.shape
    maskf = mask.astype(jnp.float32)
    gt = (1.0 - target) ** gamma
    neg = jnp.sum(jnp.log(1.0 - pred + eps) * (pred ** alpha) * gt)

    feat = jnp.transpose(pred, (0, 2, 3, 1)).reshape(B, H * W, C)
    M = ind.shape[1]
    idx = jnp.broadcast_to(ind[:, :, None].astype(jnp.int32), (B, M, C))
    pos_pix = jnp.take_along_axis(feat, idx, axis=1)                                    # (B, M, C)
    pos_pred = jnp.take_along_axis(pos_pix, cat[:, :, None].astype(jnp.int32), axis=2)  # (B, M, 1)

    num_pos = jnp.sum(maskf)
    pos = jnp.sum(jnp.log(pos_pred + eps) * ((1.0 - pos_pred) ** alpha) * maskf[:, :, None])
    return jnp.where(num_pos == 0.0,
                     -neg * weight,
                     -(pos + neg) * weight / jnp.maximum(num_pos, 1e-12))


def _make_inputs(key, B, C, H, W, M, dtype, zero_mask):
    k1, k2, k3, k4, k5 = jax.random.split(key, 5)
    pred = jax.nn.sigmoid(jax.random.normal(k1, (B, C, H, W), jnp.float32)).astype(dtype)
    target = jax.random.uniform(k2, (B, C, H, W), dtype=jnp.float32).astype(dtype)
    ind = jax.random.randint(k3, (B, M), 0, H * W)
    cat = jax.random.randint(k4, (B, M), 0, C)
    mask = (jax.random.uniform(k5, (B, M)) > 0.3).astype(jnp.float32)
    if zero_mask:
        mask = jnp.zeros_like(mask)
    return pred, target, ind, mask, cat


if __name__ == "__main__":
    key = jax.random.PRNGKey(0)
    cases = [
        # baseline: single tile, C not a multiple of 8
        dict(B=2, C=4, H=16, W=16, M=8, dtype=jnp.float32, tile=None, zero_mask=False),
        # multi-tile + ragged last tile (480 = 3*128 + 96) + sublane folding (C=16)
        dict(B=2, C=16, H=24, W=20, M=16, dtype=jnp.float32, tile=128, zero_mask=False),
        # B == 1 -> HW axis split into two parallel halves; bf16 streaming path
        dict(B=1, C=16, H=16, W=32, M=8, dtype=jnp.bfloat16, tile=128, zero_mask=False),
        # num_pos == 0 branch
        dict(B=2, C=4, H=16, W=16, M=8, dtype=jnp.float32, tile=None, zero_mask=True),
    ]
    for i, c in enumerate(cases):
        key, sub = jax.random.split(key)
        pred, target, ind, mask, cat = _make_inputs(
            sub, c["B"], c["C"], c["H"], c["W"], c["M"], c["dtype"], c["zero_mask"])
        out = jax.block_until_ready(
            fast_focal_loss(pred, target, ind, mask, cat, tile=c["tile"]))
        ref = _reference_loss(pred.astype(jnp.float32), target.astype(jnp.float32),
                              ind, mask, cat)
        assert jnp.allclose(out, ref, rtol=2e-4, atol=2e-4), (i, out, ref)
    print("KERNEL_OK")
</pallas_src>

<mosaic_0001>
module attributes {stable_mosaic.version = 11 : i64} {
  func.func @_neg_focal_kernel(%arg0: i32, %arg1: i32, %arg2: i32, %arg3: memref<1x4x256xf32, #tpu.memory_space<vmem>>, %arg4: memref<1x4x256xf32, #tpu.memory_space<vmem>>, %arg5: memref<1x1x128xf32, #tpu.memory_space<vmem>>, %arg6: memref<4x256xf32, #tpu.memory_space<vmem>>) attributes {dimension_semantics = [#tpu.dimension_semantics<parallel>, #tpu.dimension_semantics<parallel>, #tpu.dimension_semantics<arbitrary>], iteration_bounds = array<i64: 2, 1, 1>, scalar_prefetch = 0 : i64, scratch_operands = 1 : i64, tpu.core_type = #tpu.core_type<tc>, window_params = [{transform_indices = @transform_0, window_bounds = array<i64: 1, 4, 256>}, {transform_indices = @transform_1, window_bounds = array<i64: 1, 4, 256>}, {transform_indices = @transform_2, window_bounds = array<i64: 1, 1, 128>}]} {
    %c0_i32 = arith.constant 0 : i32
    %0 = arith.cmpi eq, %arg2, %c0_i32 : i32
    %1 = arith.extui %0 : i1 to i32
    %c0_i32_0 = arith.constant 0 : i32
    %2 = arith.cmpi ne, %1, %c0_i32_0 : i32
    scf.if %2 {
      %cst_14 = arith.constant 0.000000e+00 : f32
      %25 = vector.broadcast %cst_14 : f32 to vector<4x256xf32>
      %c0_15 = arith.constant 0 : index
      %c0_16 = arith.constant 0 : index
      %26 = vector.load %arg6[%c0_15, %c0_16] : memref<4x256xf32, #tpu.memory_space<vmem>>, vector<4x256xf32>
      tpu.vector_store %arg6[%c0_15, %c0_16], %25 {strides = array<i32>} : memref<4x256xf32, #tpu.memory_space<vmem>>, vector<4x256xf32>,
    } else {
    }
    %c0 = arith.constant 0 : index
    %c0_1 = arith.constant 0 : index
    %c0_2 = arith.constant 0 : index
    %3 = vector.load %arg3[%c0, %c0_1, %c0_2] : memref<1x4x256xf32, #tpu.memory_space<vmem>>, vector<1x4x256xf32>
    %4 = vector.shape_cast %3 : vector<1x4x256xf32> to vector<4x256xf32>
    %c0_3 = arith.constant 0 : index
    %c0_4 = arith.constant 0 : index
    %c0_5 = arith.constant 0 : index
    %5 = vector.load %arg4[%c0_3, %c0_4, %c0_5] : memref<1x4x256xf32, #tpu.memory_space<vmem>>, vector<1x4x256xf32>
    %6 = vector.shape_cast %5 : vector<1x4x256xf32> to vector<4x256xf32>
    %cst = arith.constant 1.000000e+00 : f32
    %7 = vector.broadcast %cst : f32 to vector<4x256xf32>
    %8 = arith.subf %7, %4 : vector<4x256xf32>
    %cst_6 = arith.constant 9.99999996E-13 : f32
    %9 = vector.broadcast %cst_6 : f32 to vector<4x256xf32>
    %10 = arith.addf %8, %9 : vector<4x256xf32>
    %11 = math.log %10 : vector<4x256xf32>
    %12 = arith.mulf %4, %4 : vector<4x256xf32>
    %13 = arith.mulf %11, %12 : vector<4x256xf32>
    %cst_7 = arith.constant 1.000000e+00 : f32
    %14 = vector.broadcast %cst_7 : f32 to vector<4x256xf32>
    %15 = arith.subf %14, %6 : vector<4x256xf32>
    %16 = arith.mulf %15, %15 : vector<4x256xf32>
    %17 = arith.mulf %16, %16 : vector<4x256xf32>
    %18 = arith.mulf %13, %17 : vector<4x256xf32>
    %c0_8 = arith.constant 0 : index
    %c0_9 = arith.constant 0 : index
    %19 = vector.load %arg6[%c0_8, %c0_9] : memref<4x256xf32, #tpu.memory_space<vmem>>, vector<4x256xf32>
    %20 = arith.addf %19, %18 : vector<4x256xf32>
    %c0_10 = arith.constant 0 : index
    %c0_11 = arith.constant 0 : index
    %21 = vector.load %arg6[%c0_10, %c0_11] : memref<4x256xf32, #tpu.memory_space<vmem>>, vector<4x256xf32>
    tpu.vector_store %arg6[%c0_10, %c0_11], %20 {strides = array<i32>} : memref<4x256xf32, #tpu.memory_space<vmem>>, vector<4x256xf32>,
    %c0_i32_12 = arith.constant 0 : i32
    %22 = arith.cmpi eq, %arg2, %c0_i32_12 : i32
    %23 = arith.extui %22 : i1 to i32
    %c0_i32_13 = arith.constant 0 : i32
    %24 = arith.cmpi ne, %23, %c0_i32_13 : i32
    scf.if %24 {
      %25 = tpu.iota {dimensions = array<i32: 2>} : vector<1x1x128xi32>
      %c0_i32_14 = arith.constant 0 : i32
      %26 = vector.broadcast %c0_i32_14 : i32 to vector<1x1x128xi32>
      %27 = arith.cmpi eq, %25, %26 : vector<1x1x128xi32>
      %c0_15 = arith.constant 0 : index
      %c0_16 = arith.constant 0 : index
      %28 = vector.load %arg6[%c0_15, %c0_16] : memref<4x256xf32, #tpu.memory_space<vmem>>, vector<4x256xf32>
      %29 = vector.shape_cast %28 : vector<4x256xf32> to vector<1x4x256xf32>
      %cst_17 = arith.constant dense<0.000000e+00> : vector<1xf32>
      %30 = vector.multi_reduction <add>, %29, %cst_17 [1, 2] : vector<1x4x256xf32> to vector<1xf32>
      %31 = vector.shape_cast %30 : vector<1xf32> to vector<1x1x1xf32>
      %32 = vector.extract %31[0, 0, 0] : f32 from vector<1x1x1xf32>
      %cst_18 = arith.constant 0.000000e+00 : f32
      %33 = vector.broadcast %32 : f32 to vector<1x1x128xf32>
      %34 = vector.broadcast %cst_18 : f32 to vector<1x1x128xf32>
      %35 = arith.select %27, %33, %34 : vector<1x1x128xi1>, vector<1x1x128xf32>
      %c0_19 = arith.constant 0 : index
      %c0_20 = arith.constant 0 : index
      %c0_21 = arith.constant 0 : index
      %36 = vector.load %arg5[%c0_19, %c0_20, %c0_21] : memref<1x1x128xf32, #tpu.memory_space<vmem>>, vector<1x1x128xf32>
      tpu.vector_store %arg5[%c0_19, %c0_20, %c0_21], %35 {strides = array<i32>} : memref<1x1x128xf32, #tpu.memory_space<vmem>>, vector<1x1x128xf32>,
    } else {
    }
    return
  }
  func.func @transform_0(%arg0: i32, %arg1: i32, %arg2: i32) -> (i32, i32, i32) {
    %c1_i32 = arith.constant 1 : i32
    %0 = arith.muli %arg1, %c1_i32 : i32
    %1 = arith.addi %0, %arg2 : i32
    %c0_i32 = arith.constant 0 : i32
    %c0_i32_0 = arith.constant 0 : i32
    return %arg0, %c0_i32, %1 : i32, i32, i32
  }
  func.func @transform_1(%arg0: i32, %arg1: i32, %arg2: i32) -> (i32, i32, i32) {
    %c1_i32 = arith.constant 1 : i32
    %0 = arith.muli %arg1, %c1_i32 : i32
    %1 = arith.addi %0, %arg2 : i32
    %c0_i32 = arith.constant 0 : i32
    %c0_i32_0 = arith.constant 0 : i32
    return %arg0, %c0_i32, %1 : i32, i32, i32
  }
  func.func @transform_2(%arg0: i32, %arg1: i32, %arg2: i32) -> (i32, i32, i32) {
    %c0_i32 = arith.constant 0 : i32
    %c0_i32_0 = arith.constant 0 : i32
    return %arg0, %arg1, %c0_i32 : i32, i32, i32
  }
}

</mosaic_0001>

<bundles_post_ra>
// kernel: tpu_custom_call.1
= control target key start
LH: loop header
LB: loop body
LE: loop exit
PB: predicated region body
PF: predicated region fallthrough
CT: control target
= control target key end

     0   :  { %7 = vsyncpa [#allocation4], 0  ;;  %s881_s0 = inlined_call_operand.hbm [shape: f32[2,4,256], index: 0, kind: input, shape index: {}]   ;;  %s882_s1 = inlined_call_operand.hbm [shape: f32[2,4,256], index: 1, kind: input, shape index: {}]   ;;  %s883_s2 = inlined_call_operand.hbm [shape: f32[2,1,128], index: 2, kind: output, shape index: {}]  }
   0x1   :  { %9 = vsyncpa [#allocation4 + $0x1], 0 }
   0x2   :  { %10 = vsyncpa [#allocation7], 0 }
   0x3   :  { %12 = vsyncpa [#allocation7 + $0x1], 0 }
   0x4   :  { %13 = vsyncpa [#allocation5], 0 }
   0x5   :  { %15 = vsyncpa [#allocation5 + $0x1], 0  ;;  %s660_s9 = smov 0   ;;  %s662_s10 = smov 0  }
   0x6   :  { %s664_s11 = smov 0   ;;  %s666_s12 = smov 0  }
   0x7   :  { %s668_s13 = smov 0   ;;  %s670_s14 = smov 0  }
   0x8 LB: > { %s405_s15 = sadd.s32 4294967295, %s640_s14   ;;  %s406_s16 = sadd.s32 4294967294, %s640_s14   ;;  %s640_s14 = sphi %s670_s14, %s21_s14   ;;  %s636_s13 = sphi %s668_s13, %s903_s13   ;;  %s632_s12 = sphi %s666_s12, %s902_s12   ;;  %s628_s11 = sphi %s664_s11, %s901_s11   ;;  %s624_s10 = sphi %s662_s10, %s900_s10   ;;  %s620_s9 = sphi %s660_s9, %s899_s9  }
   0x9   : > { %s40_s17 = sadd.s32 1, %s636_s13  ;;  %s51_s18 = sadd.s32 1, %s628_s11 }
   0xa   : > { %p42_p0 = scmp.ge.s32.totalorder %s40_s17, 2  ;;  %p58_p1 = scmp.ne.s32.totalorder %s628_s11, %s624_s10 }
   0xb   : > { %p59_p2 = scmp.eq.s32.totalorder %s640_s14, 0  ;;  %p64_p3 = scmp.ne.s32.totalorder %s624_s10, %s620_s9 }
   0xc   : > { %s905_s17 = smov (%p42_p0, %s40_s17), 0  ;;  %p65_p5 = scmp.eq.s32.totalorder %s405_s15, 0 }
   0xd   : > { %p701_p4 = por %p59_p2, %p58_p1  ;;  %s46_s20 = ssub.s32 %s636_s13, %s905_s17 }
   0xe   : > { %p120_p6 = scmp.eq.s32.totalorder %s405_s15, 1  ;;  %p49_p7 = scmp.eq.s32.totalorder %s46_s20, 0 }
   0xf   : > { %p707_p8 = por %p65_p5, %p64_p3  ;;  %p126_p10 = scmp.eq.s32.totalorder %s406_s16, 1 }
  0x10   : > { %p711_p9 = por %p120_p6, %p58_p1  ;;  %p442_p13 = scmp.lt.s32.totalorder %s640_s14, 2 }
  0x11   : > { %s887_s21 = scalar_select %p707_p8, 1, 0 }
  0x12   : > { %s888_s22 = scalar_select %p711_p9, 1, 0 }
  0x13   : > { %s716_s23 = scalar_select %p49_p7, %s628_s11, %s51_s18  }
  0x14   : > { %p718_p11 = por %p126_p10, %p64_p3  ;;  %s725_s25 = sand.u32 1, %s628_s11  }
  0x15   : > { %s409_s26 = sshll.u32 %s725_s25, 3  ;;  %s421_s27 = sshll.u32 %s636_s13, 7 }
  0x16   : > { %s889_s24 = scalar_select %p718_p11, 1, 0 }
  0x17   : > { %s734_s30 = scalar_lea.hbm %s881_s0, %s421_s27  ;;  %s150_s3 = scalar_lea.vmem [#allocation3], %s409_s26 }
  0x18   : > { %s161_s4 = sshll.u32 %s150_s3, 4  ;;  %p742_p0 = pnand %p442_p13, %p701_p4  ;;  %s738_s4 = int_to_ptr.vmem [resolvable:$true] %s161_s4 }
  0x19   : > { %s147_s6 = scalar_lea.sflag [#allocation4], %s725_s25  ;;  %s494_s7 = scalar_lea.hbm %s734_s30, 128 }
  0x1a   : > { %p495_p3 = scmp.ne.s32.totalorder %s734_s30, %s494_s7  ;;  %p496_p5 = pneg %p742_p0 }
  0x1b   : > { %s499_s16 = scalar_lea.hbm %s881_s0, 256  ;;  %p500_p4 = scmp.lt.u32.totalorder %s734_s30, %s881_s0 }
  0x1c   : > { %p497_p6 = pnand %p496_p5, %p495_p3  ;;  %p501_p10 = scmp.lt.u32.totalorder %s499_s16, %s494_s7 }
  0x1d   : > { %p503_p12 = scmp.lt.u32.totalorder %s494_s7, %s734_s30 }
  0x1e   : > { %p498_p7 = pneg %p497_p6  ;;  %p502_p13 = por %p501_p10, %p500_p4 }
  0x20   : > { %p504_p1 = por %p503_p12, %p502_p13 }
  0x22   : > { %p505_p2 = pnand %p504_p1, %p498_p7 }
  0x24   : > { %508 = shalt.err (!%p505_p2)
}
  0x25   : > { %s509_s20 = scalar_lea.vmem %s738_s4, 128  ;;  %s642_s28 = smov [#allocation3]  }
  0x26   : > { %p510_p3 = scmp.ne.s32.totalorder %s738_s4, %s509_s20  ;;  %s514_s29 = sshll.u32 %s642_s28, 4  ;;  %s515_s29 = int_to_ptr.vmem [resolvable:$false] %s514_s29 }
  0x27   : > { %s516_s3 = scalar_lea.vmem %s515_s29, 256  ;;  %p517_p9 = scmp.lt.s32.totalorder %s738_s4, %s515_s29 }
  0x28   : > { %p512_p6 = pnand %p510_p3, %p496_p5  ;;  %p518_p4 = scmp.lt.s32.totalorder %s516_s3, %s509_s20 }
  0x2a   : > { %p513_p11 = pneg %p512_p6  ;;  %p519_p10 = por %p518_p4, %p517_p9 }
  0x2c   : > { %p520_p12 = pnand %p519_p10, %p513_p11 }
  0x2e   : > { %523 = shalt.err (!%p520_p12)
}
  0x2f   : > { %434 = dma.hbm_to_vmem [thread:$0]  (!%p742_p0), %s734_s30, 128, %s738_s4, %s147_s6  }
  0x30   : > { %p891_p1 = scmp.lt.s32.totalorder %s640_s14, 3  ;;  %p892_p2 = scmp.ge.s32.totalorder %s640_s14, 1 }
  0x31   : > { %s787_s16 = scalar_lea.hbm %s882_s1, %s421_s27  ;;  %s172_s18 = scalar_lea.vmem [#allocation6], %s409_s26 }
  0x32   : > { %p778_p7 = pnand %p892_p2, %p891_p1  ;;  %s183_s19 = sshll.u32 %s172_s18, 4  ;;  %s184_s19 = int_to_ptr.vmem [resolvable:$true] %s183_s19 }
  0x33   : > { %s169_s30 = scalar_lea.sflag [#allocation7], %s725_s25  ;;  %s524_s4 = scalar_lea.hbm %s787_s16, 128 }
  0x34   : > { %s893_s7 = scalar_select %p778_p7, 1, 0 }
  0x35   : > { %p525_p9 = scmp.ne.s32.totalorder %s787_s16, %s524_s4  ;;  %s529_s27 = scalar_lea.hbm %s882_s1, 256 }
  0x36   : > { %p530_p3 = scmp.lt.u32.totalorder %s787_s16, %s882_s1  ;;  %p531_p6 = scmp.lt.u32.totalorder %s529_s27, %s524_s4 }
  0x37   : > { %p527_p11 = pnand %p525_p9, %p496_p5  ;;  %p533_p10 = scmp.lt.u32.totalorder %s524_s4, %s787_s16 }
  0x38   : > { %p532_p4 = por %p531_p6, %p530_p3 }
  0x39   : > { %p528_p13 = pneg %p527_p11 }
  0x3a   : > { %p534_p12 = por %p533_p10, %p532_p4 }
  0x3c   : > { %p535_p1 = pnand %p534_p12, %p528_p13 }
  0x3e   : > { %538 = shalt.err (!%p535_p1)
}
  0x3f   : > { %s539_s25 = scalar_lea.vmem %s184_s19, 128  ;;  %s643_s26 = smov [#allocation6]  }
  0x40   : > { %p540_p2 = scmp.ne.s32.totalorder %s184_s19, %s539_s25  ;;  %s544_s3 = sshll.u32 %s643_s26, 4  ;;  %s545_s3 = int_to_ptr.vmem [resolvable:$false] %s544_s3 }
  0x41   : > { %s546_s8 = scalar_lea.vmem %s545_s3, 256  ;;  %p547_p8 = scmp.lt.s32.totalorder %s184_s19, %s545_s3 }
  0x42   : > { %p542_p9 = pnand %p540_p2, %p496_p5  ;;  %p548_p7 = scmp.lt.s32.totalorder %s546_s8, %s539_s25 }
  0x44   : > { %p543_p11 = pneg %p542_p9  ;;  %p549_p3 = por %p548_p7, %p547_p8 }
  0x46   : > { %p550_p6 = pnand %p549_p3, %p543_p11 }
  0x48   : > { %553 = shalt.err (!%p550_p6)
}
  0x49   : > { %437 = dma.hbm_to_vmem [thread:$0]  (!%p742_p0), %s787_s16, 128, %s184_s19, %s169_s30  }
  0x4a   : > { %p894_p13 = scmp.ne.s32.totalorder %s893_s7, 0 }
  0x4b   : > { %s814_s15 = sand.u32 (!%p894_p13), 1, %s624_s10   ;;  %p895_p5 = scmp.ne.s32.totalorder (!%p894_p13), %s887_s21, 0 }
  0x4c   : > { %192 = sbr.rel (%p894_p13) target bundleno = 333 (0x14d), region = 28  ;;  %s416_s18 = sshll.u32 (!%p894_p13), %s814_s15, 3 }
  0x4d   : > { %s195_s4 = scalar_lea.sflag (!%p894_p13), [#allocation4], %s814_s15  ;;  %s198_s6 = scalar_lea.vmem (!%p894_p13), [#allocation3], %s416_s18 }
  0x53   : > { %607 = dma.done.wait (%p895_p5), %s195_s4, 128  }
  0x54   : > { %609 = vsyncadd (%p895_p5), %s195_s4, 4294967168  ;;  %s204_s5 = scalar_lea.sflag [#allocation7], %s814_s15  ;;  %s207_s16 = scalar_lea.vmem [#allocation6], %s416_s18 }
  0x55   : > { %611 = dma.done.wait (%p895_p5), %s204_s5, 128  }
  0x56   : > { %613 = vsyncadd (%p895_p5), %s204_s5, 4294967168  ;;  %v241_v0 = vld [vmem:[%s198_s6] sm:$0xff]  ;;  %v242_v3 = vld [vmem:[%s207_s16] sm:$0xff]  ;;  %vm266_vm0 = vcmask 1043456   ;;  %v259_v23 = vlaneseq  ;;  %s418_s21 = sshll.u32 %s632_s12, 4  ;;  %s231_s7 = scalar_lea.vmem [#allocation8], %s814_s15 }
  0x57   : > { %v243_v1 = vsub.f32 1.0, %v241_v0  ;;  %v249_v4 = vsub.f32 1.0, %v242_v3  ;;  %v247_v6 = vmul.f32 %v241_v0, %v241_v0  ;;  %s296_s19 = sshll.u32 %s231_s7, 4  ;;  %s832_s28 = scalar_lea.hbm %s883_s2, %s418_s21  ;;  %s834_s19 = int_to_ptr.vmem [resolvable:$true] %s296_s19 }
  0x58   : > { %v260_v24 = vand.u32 127, %v259_v23  ;;  %s283_s29 = scalar_lea.sflag [#allocation5], %s814_s15  ;;  %s554_s25 = scalar_lea.vmem %s834_s19, 16 }
  0x59   : > { %v244_v2 = vadd.f32 1e-12, %v243_v1  ;;  %v250_v5 = vmul.f32 %v249_v4, %v249_v4  ;;  %p555_p8 = scmp.ne.s32.totalorder %s834_s19, %s554_s25  ;;  %p896_p0 = scmp.ne.s32.totalorder %s888_s22, 0 }
  0x5a   : > { %vm261_vm1 = vcmp.eq.s32.totalorder %v260_v24, 0  ;;  %s644_s12 = smov [#allocation8]  }
  0x5b   : > { %492 = vlog2.f32 %v244_v2  ;;  %v251_v9 = vmul.f32 %v250_v5, %v250_v5  ;;  %p556_p7 = pnand %p555_p8, %p896_p0  ;;  %s558_s26 = sshll.u32 %s644_s12, 4  ;;  %s559_s26 = int_to_ptr.vmem [resolvable:$false] %s558_s26 }
  0x5c   : > { %s560_s3 = scalar_lea.vmem %s559_s26, 32  ;;  %p561_p10 = scmp.lt.s32.totalorder %s834_s19, %s559_s26 }
  0x5d   : > { %p557_p4 = pneg %p556_p7  ;;  %p562_p12 = scmp.lt.s32.totalorder %s560_s3, %s554_s25 }
  0x5f   : > { %p563_p1 = por %p562_p12, %p561_p10 }
  0x61   : > { %p564_p2 = pnand %p563_p1, %p557_p4 }
  0x65   : > { %v493_v7 = vpop.eup %492 }
  0x66   : > { %v246_v8 = vmul.f32 0.6931472, %v493_v7 }
  0x68   : > { %v248_v10 = vmul.f32 %v247_v6, %v246_v8 }
  0x6a   : > { %v252_v11 = vmul.f32 %v251_v9, %v248_v10 }
  0x6c   : > { %v264_v12 = vcombine.high %v252_v11, %v252_v11  ;;  %v267_v13 = vsel %vm266_vm0, %v252_v11, 0.0 }
  0x6e   : > { %v268_v14 = vsel %vm266_vm0, %v264_v12, 0.0 }
  0x6f   : > { %v269_v15 = vadd.f32 %v268_v14, %v267_v13 }
  0x71   : > { %270 = vadd.xlane.f32.xlu0 %v269_v15 }
  0xfe   : > { %v271_v16 = vpop.xlane.xlu0 %270 }
  0xff   : > { %v272_v17 = vrot.slane %v271_v16, 4 }
 0x101   : > { %v273_v18 = vadd.f32 %v272_v17, %v271_v16 }
 0x103   : > { %v274_v19 = vrot.slane %v273_v18, 2 }
 0x105   : > { %v275_v20 = vadd.f32 %v274_v19, %v273_v18 }
 0x107   : > { %v276_v21 = vrot.slane %v275_v20, 1 }
 0x109   : > { %v277_v22 = vadd.f32 %v276_v21, %v275_v20 }
 0x10b   : > { %423 = vpush %v277_v22 }
 0x13c   : > { %s424_s30 = spop %423 }
 0x13d   : > { %v279_v25 = vstv %s424_s30 }
 0x13e   : > { %v280_v26 = vsel %vm261_vm1, %v279_v25, 0.0 }
 0x13f   : > { %281 = vst [vmem:[%s231_s7] sm:$0x1] %v280_v26 }
 0x140   : > { %567 = shalt.err (!%p564_p2)
}
 0x141   : > { %s568_s8 = scalar_lea.hbm %s832_s28, 16  ;;  %s572_s4 = scalar_lea.hbm %s883_s2, 32 }
 0x142   : > { %p569_p9 = scmp.ne.s32.totalorder %s832_s28, %s568_s8  ;;  %p573_p6 = scmp.lt.u32.totalorder %s832_s28, %s883_s2 }
 0x143   : > { %p574_p13 = scmp.lt.u32.totalorder %s572_s4, %s568_s8  ;;  %p576_p8 = scmp.lt.u32.totalorder %s568_s8, %s832_s28 }
 0x144   : > { %p570_p11 = pnand %p569_p9, %p896_p0 }
 0x145   : > { %p575_p5 = por %p574_p13, %p573_p6 }
 0x146   : > { %p571_p3 = pneg %p570_p11 }
 0x147   : > { %p577_p7 = por %p576_p8, %p575_p5 }
 0x149   : > { %p578_p4 = pnand %p577_p7, %p571_p3 }
 0x14b   : > { %581 = shalt.err (!%p578_p4)
}
 0x14c   : > { %429 = dma.vmem_to_hbm [thread:$0]  (%p896_p0), %s834_s19, 16, %s832_s28, %s283_s29  }
 0x14d PF: > { %s308_s16 = sand.u32 1, %s620_s9   ;;  %p897_p10 = scmp.ne.s32.totalorder %s889_s24, 0 }
 0x14e   : > { %p898_p12 = scmp.ge.s32.totalorder %s640_s14, 2  ;;  %s309_s21 = scalar_lea.sflag [#allocation5], %s308_s16 }
 0x150   : > { %p439_p1 = pnand %p898_p12, %p897_p10 }
 0x152   : > { %615 = dma.done.wait (!%p439_p1), %s309_s21, 16  }
 0x153   : > { %617 = vsyncadd (!%p439_p1), %s309_s21, 4294967280  ;;  %s21_s14 = sadd.s32 1, %s640_s14   ;;  %s899_s9 = smov %s624_s10 }
 0x154   : > { %p18_p2 = scmp.ge.s32.totalorder %s21_s14, 4   ;;  %s900_s10 = smov %s628_s11 }
 0x155   : > { %s901_s11 = smov %s716_s23  ;;  %s902_s12 = smov %s636_s13 }
 0x156   : > { %s903_s13 = smov %s905_s17  ;;  %20 = sbr.rel (!%p18_p2) target bundleno = 8 (0x8), region = 94 }
 0x15d   :  { %313 = vsyncpa [#allocation4], 1 }
 0x15e   :  { %315 = vsyncpa [#allocation4 + $0x1], 1 }
 0x15f   :  { %316 = vsyncpa [#allocation7], 1 }
 0x160   :  { %318 = vsyncpa [#allocation7 + $0x1], 1 }
 0x161   :  { %319 = vsyncpa [#allocation5], 1 }
 0x162   :  { %321 = vsyncpa [#allocation5 + $0x1], 1 }

</bundles_post_ra>
